<compile_context>
chip_gen: v7x
topology: tpu7x:2x2x1
jax: 0.10.0
libtpu: 0.0.40
codegen_flags: <defaults>
</compile_context>

<pallas_src>
import functools

import jax
import jax.numpy as jnp
from jax import lax
from jax.experimental import pallas as pl
from jax.experimental.pallas import tpu as pltpu


def _round_up(x, m):
    return (x + m - 1) // m * m


def _pick_row_tile(rows, bytes_per_row, budget):
    """Largest multiple-of-8 divisor of `rows` whose working set fits `budget` bytes."""
    if rows * bytes_per_row <= budget:
        return rows
    divs = [d for d in range(8, rows, 8) if rows % d == 0]
    if not divs:
        return rows                       # no legal smaller tile; take the whole axis
    fitting = [d for d in divs if d * bytes_per_row <= budget]
    return max(fitting) if fitting else min(divs)


def _pool_repeat_kernel(x_ref, se_ref, o_ref, *, w):
    # x_ref: (th, 2W)  - each row = [even spatial row | odd spatial row] of one pair
    # se_ref: (W, Wo) bf16 0/1 even-column selection matrix
    # o_ref: (r, th, Wo)
    r, th, wo = o_ref.shape
    t = x_ref[...].astype(jnp.float32)                    # (th, 2W)
    rowmax = jnp.maximum(t[:, :w], t[:, w:])              # vertical pair max  (th, W)

    # lane-neighbor max; even lanes then hold the full 2x2 window max
    shifted = jnp.concatenate([rowmax[:, 1:], rowmax[:, :1]], axis=1)
    nmax = jnp.maximum(rowmax, shifted)                   # (th, W)

    # even-column selection as ONE logical matmul, bit-exact in 3 bf16 MXU passes:
    # nmax == hi + mid + lo exactly (each bf16), selection weights are exactly 0/1.
    hi = nmax.astype(jnp.bfloat16)
    res1 = nmax - hi.astype(jnp.float32)
    mid = res1.astype(jnp.bfloat16)
    lo = (res1 - mid.astype(jnp.float32)).astype(jnp.bfloat16)
    se = se_ref[...]
    pooled = (jnp.dot(hi, se, preferred_element_type=jnp.float32)
              + jnp.dot(mid, se, preferred_element_type=jnp.float32)
              + jnp.dot(lo, se, preferred_element_type=jnp.float32))   # (th, Wo)

    o_ref[...] = jnp.broadcast_to(pooled[None], (r, th, wo)).astype(o_ref.dtype)


def _repeat_kernel(x_ref, o_ref):
    # x_ref: (1, lt); o_ref: (r, lt) - pure lane-dense broadcast copy.
    r, lt = o_ref.shape
    o_ref[...] = jnp.broadcast_to(x_ref[...], (r, lt)).astype(o_ref.dtype)


def encoder_other_path(x_nchw, *, output_channels, downsample):
    """Pallas implementation of EncoderOtherPath.forward. x: (N, Cin, H, W) NCHW."""
    N, Cin, H, W = x_nchw.shape
    assert output_channels % Cin == 0, "output_channels must be a multiple of input_channels"
    r = output_channels // Cin
    dtype = x_nchw.dtype

    if not downsample and r == 1:
        return x_nchw                                      # identity configuration

    budget = 8 << 20                                       # in+out working set per grid step
    vmem_cap = 48 << 20                                    # headroom under v7x 64 MiB VMEM

    if downsample:
        assert H % 2 == 0 and W % 2 == 0, "MaxPool2d(2, stride=2) path needs even H, W"
        Ho, Wo = H // 2, W // 2
        rows = Cin * Ho
        # contiguous (free) reshape: flattened row p = (channel, output-row) pair,
        # lanes [0:W] = even spatial row, lanes [W:2W] = odd spatial row.
        x2 = x_nchw.reshape(N, rows, 2 * W)

        in_row_b = _round_up(2 * W, 128) * 4
        out_row_b = r * _round_up(Wo, 128) * 4
        th = _pick_row_tile(rows, in_row_b + out_row_b, budget)
        n_tiles = rows // th

        # 0/1 even-column selection matrix: (nmax @ sel)[i, j] == nmax[i, 2*j]
        sel = (jnp.arange(W, dtype=jnp.int32)[:, None]
               == 2 * jnp.arange(Wo, dtype=jnp.int32)[None, :]).astype(jnp.bfloat16)

        in_blk = _round_up(th, 8) * _round_up(2 * W, 128) * 4
        out_blk = r * _round_up(th, 8) * _round_up(Wo, 128) * 4
        sel_blk = _round_up(W, 8) * _round_up(Wo, 128) * 2
        vmem_limit = min(vmem_cap, max(16 << 20,
                                       2 * (in_blk + out_blk) + out_blk
                                       + 2 * sel_blk + (8 << 20)))

        out3 = pl.pallas_call(
            functools.partial(_pool_repeat_kernel, w=W),
            out_shape=jax.ShapeDtypeStruct((N, r, rows, Wo), dtype),
            grid=(N, n_tiles),
            in_specs=[
                pl.BlockSpec((None, th, 2 * W), lambda n, t: (n, t, 0)),
                # constant block index -> fetched once, resident across the whole grid
                pl.BlockSpec((W, Wo), lambda n, t: (0, 0)),
            ],
            out_specs=pl.BlockSpec((None, r, th, Wo), lambda n, t: (n, 0, t, 0)),
            compiler_params=pltpu.CompilerParams(
                dimension_semantics=("parallel", "parallel"),
                vmem_limit_bytes=int(vmem_limit)),
        )(x2, sel)
        # contiguous (free) reshape; channel index k*Cin + c == torch repeat(1, r, 1, 1)
        return out3.reshape(N, r * Cin, Ho, Wo)

    # --- repeat-only path (r > 1, no pooling): lane-dense broadcast copy ---
    L = Cin * H * W
    x3 = x_nchw.reshape(N, 1, L)
    lane_tiles = [d for d in range(128, L + 1, 128) if L % d == 0]
    if lane_tiles:
        fitting = [d for d in lane_tiles if (1 + r) * d * 4 <= budget]
        lt = max(fitting) if fitting else min(lane_tiles)
    else:
        lt = L                                             # rare: L not a multiple of 128
    n_tiles = L // lt

    in_blk = 8 * _round_up(lt, 128) * 4
    out_blk = _round_up(r, 8) * _round_up(lt, 128) * 4
    vmem_limit = min(vmem_cap, max(16 << 20, 2 * (in_blk + out_blk) + out_blk + (8 << 20)))

    out3 = pl.pallas_call(
        _repeat_kernel,
        out_shape=jax.ShapeDtypeStruct((N, r, L), dtype),
        grid=(N, n_tiles),
        in_specs=[pl.BlockSpec((None, 1, lt), lambda n, t: (n, 0, t))],
        out_specs=pl.BlockSpec((None, r, lt), lambda n, t: (n, 0, t)),
        compiler_params=pltpu.CompilerParams(
            dimension_semantics=("parallel", "parallel"),
            vmem_limit_bytes=int(vmem_limit)),
    )(x3)
    return out3.reshape(N, r * Cin, H, W)


def ref_forward(x, *, output_channels, downsample):
    """Pure-JAX reference mirroring the PyTorch module's forward (NCHW)."""
    y = x
    if downsample:
        y = lax.reduce_window(y, -jnp.inf, lax.max,
                              (1, 1, 2, 2), (1, 1, 2, 2), "VALID")
    cin = x.shape[1]
    if output_channels != cin:
        y = jnp.tile(y, (1, output_channels // cin, 1, 1))
    return y


if __name__ == "__main__":
    N, Cin, H, W = 2, 4, 16, 16
    x = jax.random.normal(jax.random.PRNGKey(0), (N, Cin, H, W), dtype=jnp.float32)

    # (downsample, output_channels): pool+repeat, repeat-only, pool-only, identity
    for downsample, cout in ((True, 8), (False, 8), (True, 4), (False, 4)):
        out = jax.block_until_ready(
            encoder_other_path(x, output_channels=cout, downsample=downsample))
        ref = jax.block_until_ready(
            ref_forward(x, output_channels=cout, downsample=downsample))
        assert out.shape == ref.shape, (downsample, cout, out.shape, ref.shape)
        assert jnp.allclose(out, ref, rtol=1e-5, atol=1e-5), (
            downsample, cout, float(jnp.max(jnp.abs(out - ref))))

    print("KERNEL_OK")
</pallas_src>

<mosaic_0001>
module attributes {stable_mosaic.version = 11 : i64} {
  func.func @_pool_repeat_kernel(%arg0: i32, %arg1: i32, %arg2: memref<1x32x32xf32, #tpu.memory_space<vmem>>, %arg3: memref<16x8xbf16, #tpu.memory_space<vmem>>, %arg4: memref<1x2x32x8xf32, #tpu.memory_space<vmem>>) attributes {dimension_semantics = [#tpu.dimension_semantics<parallel>, #tpu.dimension_semantics<parallel>], iteration_bounds = array<i64: 2, 1>, scalar_prefetch = 0 : i64, scratch_operands = 0 : i64, tpu.core_type = #tpu.core_type<tc>, window_params = [{transform_indices = @transform_0, window_bounds = array<i64: 1, 32, 32>}, {pipeline_mode = #tpu.pipeline_mode<synchronous>, transform_indices = @transform_1, window_bounds = array<i64: 16, 8>}, {transform_indices = @transform_2, window_bounds = array<i64: 1, 2, 32, 8>}]} {
    %c0 = arith.constant 0 : index
    %c0_0 = arith.constant 0 : index
    %c0_1 = arith.constant 0 : index
    %0 = vector.load %arg2[%c0, %c0_0, %c0_1] : memref<1x32x32xf32, #tpu.memory_space<vmem>>, vector<1x32x32xf32>
    %1 = vector.shape_cast %0 : vector<1x32x32xf32> to vector<32x32xf32>
    %2 = vector.extract_strided_slice %1 {offsets = [0, 0], sizes = [32, 16], strides = [1, 1]} : vector<32x32xf32> to vector<32x16xf32>
    %3 = vector.extract_strided_slice %1 {offsets = [0, 16], sizes = [32, 16], strides = [1, 1]} : vector<32x32xf32> to vector<32x16xf32>
    %4 = arith.maximumf %2, %3 : vector<32x16xf32>
    %5 = vector.extract_strided_slice %4 {offsets = [0, 1], sizes = [32, 15], strides = [1, 1]} : vector<32x16xf32> to vector<32x15xf32>
    %6 = vector.extract_strided_slice %4 {offsets = [0, 0], sizes = [32, 1], strides = [1, 1]} : vector<32x16xf32> to vector<32x1xf32>
    %7 = tpu.concatenate %5, %6 in 1 : vector<32x15xf32>, vector<32x1xf32> -> vector<32x16xf32>
    %8 = arith.maximumf %4, %7 : vector<32x16xf32>
    %9 = arith.truncf %8 : vector<32x16xf32> to vector<32x16xbf16>
    %10 = arith.extf %9 : vector<32x16xbf16> to vector<32x16xf32>
    %11 = arith.subf %8, %10 : vector<32x16xf32>
    %12 = arith.truncf %11 : vector<32x16xf32> to vector<32x16xbf16>
    %13 = arith.extf %12 : vector<32x16xbf16> to vector<32x16xf32>
    %14 = arith.subf %11, %13 : vector<32x16xf32>
    %15 = arith.truncf %14 : vector<32x16xf32> to vector<32x16xbf16>
    %c0_2 = arith.constant 0 : index
    %c0_3 = arith.constant 0 : index
    %16 = vector.load %arg3[%c0_2, %c0_3] : memref<16x8xbf16, #tpu.memory_space<vmem>>, vector<16x8xbf16>
    %cst = arith.constant dense<0.000000e+00> : vector<32x8xf32>
    %17 = tpu.matmul %9, %16, %cst {dimension_numbers = #tpu.dot_dimension_numbers<[1], [0], [0], [1], [0, 0, 1, 1], [], []>} : vector<32x16xbf16>, vector<16x8xbf16>, vector<32x8xf32> -> vector<32x8xf32>
    %cst_4 = arith.constant dense<0.000000e+00> : vector<32x8xf32>
    %18 = tpu.matmul %12, %16, %cst_4 {dimension_numbers = #tpu.dot_dimension_numbers<[1], [0], [0], [1], [0, 0, 1, 1], [], []>} : vector<32x16xbf16>, vector<16x8xbf16>, vector<32x8xf32> -> vector<32x8xf32>
    %19 = arith.addf %17, %18 : vector<32x8xf32>
    %cst_5 = arith.constant dense<0.000000e+00> : vector<32x8xf32>
    %20 = tpu.matmul %15, %16, %cst_5 {dimension_numbers = #tpu.dot_dimension_numbers<[1], [0], [0], [1], [0, 0, 1, 1], [], []>} : vector<32x16xbf16>, vector<16x8xbf16>, vector<32x8xf32> -> vector<32x8xf32>
    %21 = arith.addf %19, %20 : vector<32x8xf32>
    %22 = vector.shape_cast %21 : vector<32x8xf32> to vector<1x32x8xf32>
    %23 = vector.shape_cast %22 : vector<1x32x8xf32> to vector<1x32x8xf32>
    %24 = vector.broadcast %23 : vector<1x32x8xf32> to vector<2x32x8xf32>
    %c0_6 = arith.constant 0 : index
    %c0_7 = arith.constant 0 : index
    %c0_8 = arith.constant 0 : index
    %c0_9 = arith.constant 0 : index
    %25 = vector.load %arg4[%c0_6, %c0_7, %c0_8, %c0_9] : memref<1x2x32x8xf32, #tpu.memory_space<vmem>>, vector<1x2x32x8xf32>
    %26 = vector.shape_cast %25 : vector<1x2x32x8xf32> to vector<2x32x8xf32>
    %27 = vector.shape_cast %24 : vector<2x32x8xf32> to vector<1x2x32x8xf32>
    tpu.vector_store %arg4[%c0_6, %c0_7, %c0_8, %c0_9], %27 {strides = array<i32>} : memref<1x2x32x8xf32, #tpu.memory_space<vmem>>, vector<1x2x32x8xf32>,
    return
  }
  func.func @transform_0(%arg0: i32, %arg1: i32) -> (i32, i32, i32) {
    %c0_i32 = arith.constant 0 : i32
    %c0_i32_0 = arith.constant 0 : i32
    return %arg0, %arg1, %c0_i32 : i32, i32, i32
  }
  func.func @transform_1(%arg0: i32, %arg1: i32) -> (i32, i32) {
    %c0_i32 = arith.constant 0 : i32
    %c0_i32_0 = arith.constant 0 : i32
    %c0_i32_1 = arith.constant 0 : i32
    return %c0_i32, %c0_i32_0 : i32, i32
  }
  func.func @transform_2(%arg0: i32, %arg1: i32) -> (i32, i32, i32, i32) {
    %c0_i32 = arith.constant 0 : i32
    %c0_i32_0 = arith.constant 0 : i32
    %c0_i32_1 = arith.constant 0 : i32
    return %arg0, %c0_i32, %arg1, %c0_i32_0 : i32, i32, i32, i32
  }
}

</mosaic_0001>

<bundles_post_ra>
// kernel: tpu_custom_call.1
= control target key start
LH: loop header
LB: loop body
LE: loop exit
PB: predicated region body
PF: predicated region fallthrough
CT: control target
= control target key end

     0   :  { %7 = vsyncpa [#allocation3], 0  ;;  %s916_s0 = inlined_call_operand.hbm [shape: f32[2,32,32], index: 0, kind: input, shape index: {}]   ;;  %s917_s1 = inlined_call_operand.vmem [shape: bf16[16,8], index: 1, kind: input, shape index: {}]   ;;  %s918_s2 = inlined_call_operand.vmem [shape: f32[2,2,32,8], index: 2, kind: output, shape index: {}]  }
   0x1   :  { %9 = vsyncpa [#allocation3 + $0x1], 0  ;;  %s779_s9 = smov 0   ;;  %s781_s10 = smov 0  }
   0x2   :  { %s783_s11 = smov 0   ;;  %s785_s12 = smov 0  }
   0x3   :  { %s787_s13 = smov 0   ;;  %s789_s14 = smov 0  }
   0x4 LB: > { %s558_s15 = sadd.s32 4294967295, %s756_s14   ;;  %s27_s16 = sadd.s32 1, %s752_s13  ;;  %s756_s14 = sphi %s789_s14, %s15_s14   ;;  %s752_s13 = sphi %s787_s13, %s926_s13   ;;  %s748_s12 = sphi %s785_s12, %s925_s12   ;;  %s744_s11 = sphi %s783_s11, %s924_s11   ;;  %s740_s10 = sphi %s781_s10, %s923_s10   ;;  %s736_s9 = sphi %s779_s9, %s922_s9  }
   0x5   : > { %p29_p0 = scmp.ge.s32.totalorder %s27_s16, 2  ;;  %s36_s17 = sadd.s32 1, %s744_s11 }
   0x6   : > { %p43_p1 = scmp.ne.s32.totalorder %s744_s11, %s740_s10  ;;  %p44_p2 = scmp.eq.s32.totalorder %s756_s14, 0 }
   0x7   : > { %s928_s16 = smov (%p29_p0, %s27_s16), 0  ;;  %p49_p4 = scmp.ne.s32.totalorder %s740_s10, %s736_s9 }
   0x8   : > { %p815_p3 = por %p44_p2, %p43_p1  ;;  %s31_s19 = ssub.s32 %s752_s13, %s928_s16 }
   0x9   : > { %p50_p5 = scmp.eq.s32.totalorder %s558_s15, 0  ;;  %p34_p6 = scmp.eq.s32.totalorder %s31_s19, 0 }
   0xa   : > { %p621_p8 = scmp.lt.s32.totalorder %s756_s14, 2  ;;  %s125_s22 = sand.u32 1, %s744_s11  }
   0xb   : > { %p822_p7 = por %p50_p5, %p49_p4  ;;  %s578_s23 = sshll.u32 %s752_s13, 9 }
   0xc   : > { %s828_s21 = scalar_select %p34_p6, %s744_s11, %s36_s17  }
   0xd   : > { %s562_s24 = sshll.u32 %s125_s22, 5  ;;  %s835_s27 = scalar_lea.hbm %s916_s0, %s578_s23 }
   0xe   : > { %s129_s28 = scalar_lea.vmem [#allocation2], %s562_s24  ;;  %p839_p9 = pnand %p621_p8, %p815_p3 }
   0xf   : > { %s138_s29 = sshll.u32 %s129_s28, 4  ;;  %s845_s3 = scalar_lea.sflag [#allocation3], %s125_s22  ;;  %s843_s29 = int_to_ptr.vmem [resolvable:$true] %s138_s29 }
  0x10   : > { %s676_s4 = scalar_lea.hbm %s835_s27, 512  ;;  %p678_p11 = pneg %p839_p9 }
  0x11   : > { %p677_p10 = scmp.ne.s32.totalorder %s835_s27, %s676_s4  ;;  %s681_s7 = scalar_lea.hbm %s916_s0, 1024 }
  0x12   : > { %p682_p0 = scmp.lt.u32.totalorder %s835_s27, %s916_s0  ;;  %p683_p1 = scmp.lt.u32.totalorder %s681_s7, %s676_s4 }
  0x13   : > { %p679_p12 = pnand %p678_p11, %p677_p10  ;;  %p685_p3 = scmp.lt.u32.totalorder %s676_s4, %s835_s27 }
  0x14   : > { %p684_p2 = por %p683_p1, %p682_p0 }
  0x15   : > { %p680_p13 = pneg %p679_p12 }
  0x16   : > { %p686_p4 = por %p685_p3, %p684_p2 }
  0x18   : > { %p687_p5 = pnand %p686_p4, %p680_p13 }
  0x1a   : > { %690 = shalt.err (!%p687_p5)
}
  0x1b   : > { %s691_s15 = scalar_lea.vmem %s843_s29, 512  ;;  %s758_s17 = smov [#allocation2]  }
  0x1c   : > { %p692_p6 = scmp.ne.s32.totalorder %s843_s29, %s691_s15  ;;  %s696_s18 = sshll.u32 %s758_s17, 4  ;;  %s697_s18 = int_to_ptr.vmem [resolvable:$false] %s696_s18 }
  0x1d   : > { %s698_s19 = scalar_lea.vmem %s697_s18, 1024  ;;  %p699_p12 = scmp.lt.s32.totalorder %s843_s29, %s697_s18 }
  0x1e   : > { %p694_p8 = pnand %p692_p6, %p678_p11  ;;  %p700_p0 = scmp.lt.s32.totalorder %s698_s19, %s691_s15 }
  0x20   : > { %p695_p10 = pneg %p694_p8  ;;  %p701_p1 = por %p700_p0, %p699_p12 }
  0x22   : > { %p702_p2 = pnand %p701_p1, %p695_p10 }
  0x24   : > { %705 = shalt.err (!%p702_p2)
}
  0x25   : > { %s759_s22 = smov 128   ;;  %s760_s23 = smov 8  }
  0x26   : > { %620 = dma.hbm_to_vmem [thread:$0]  (!%p839_p9), %s835_s27, 512, %s843_s29, %s845_s3, %s759_s22, %s759_s22, %s760_s23  }
  0x27   : > { %p565_p11 = scmp.ge.s32.totalorder %s756_s14, 1  ;;  %p146_p13 = scmp.lt.s32.totalorder %s756_s14, 3 }
  0x29   : > { %p147_p3 = pnand %p565_p11, %p146_p13 }
  0x2a   : > { %s152_s24 = sand.u32 (!%p147_p3), 1, %s740_s10  }
  0x2b   : > { %150 = sbr.rel (%p147_p3) target bundleno = 535 (0x217), region = 28  ;;  %s566_s25 = sshll.u32 (!%p147_p3), %s152_s24, 5 }
  0x2c   : > { %s153_s26 = scalar_lea.sflag (!%p147_p3), [#allocation3], %s152_s24  ;;  %s156_s28 = scalar_lea.vmem (!%p147_p3), [#allocation2], %s566_s25 }
  0x32   : > { %731 = dma.done.wait (%p822_p7), %s153_s26, 512  }
  0x33   : > { %733 = vsyncadd (%p822_p7), %s153_s26, 4294966784  ;;  %v193_v0 = vld [vmem:[%s156_s28] sm:$0xff]  ;;  %v195_v1 = vld [vmem:[%s156_s28 + $0x10] sm:$0xff]  ;;  %s761_s4 = smov 112   ;;  %s762_s27 = smov 127   ;;  %vm245_vm0 = vcmask 121856  }
  0x34   : > { %201 = vrot.lane.b32.xlu0 %v193_v0, %s761_s4  ;;  %205 = vrot.lane.b32.xlu1 %v195_v1, %s761_s4  ;;  %v194_v2 = vld [vmem:[%s156_s28 + $0x8] sm:$0xff]  ;;  %v196_v3 = vld [vmem:[%s156_s28 + $0x18] sm:$0xff]  ;;  %s763_s20 = smov 15   ;;  %vm284_vm1 = vcmask 130048   ;;  %p183_p7 = scmp.lt.s32.totalorder %s748_s12, 1  ;;  %vm454_vm2 = vcmask 64512  }
  0x35   : > { %v675_v9 = vld [vmem:[%s917_s1] sm:$0xff]  }
  0x36   : > { %595 = vmatprep.subr.bf16.mxu0 %v675_v9  ;;  %589 = vmatprep.subr.bf16.mxu1 %v675_v9  ;;  %s930_s12 = smov (!%p183_p7, %s748_s12), 1 }
  0x37   : > { %596 = vmatpush3.bf16.msra.mxu0 %v675_v9  ;;  %590 = vmatpush3.bf16.msra.mxu1 %v675_v9  ;;  %s579_s3 = sshll.u32 %s930_s12, 6 }
  0x38   : > { %203 = vrot.lane.b32.xlu0 %v194_v2, %s761_s4  ;;  %207 = vrot.lane.b32.xlu1 %v196_v3, %s761_s4  ;;  %s190_s7 = scalar_lea.vmem %s918_s2, %s579_s3 }
  0x39   : > { %601 = vmatprep.subr.bf16.mxu0 %v675_v9 }
  0xa6   : > { %v202_v4 = vpop.permute.xlu0 %201  ;;  %v206_v6 = vpop.permute.xlu1 %205 }
  0xa7   : > { %v213_v5 = vmax.f32 %v193_v0, %v202_v4  ;;  %v215_v10 = vmax.f32 %v195_v1, %v206_v6 }
  0xa9   : > { %221 = vrot.lane.b32.xlu0 %v213_v5, %s762_s27 }
  0xaa   : > { %v204_v7 = vpop.permute.xlu0 %203  ;;  %v208_v11 = vpop.permute.xlu1 %207 }
  0xab   : > { %v214_v8 = vmax.f32 %v194_v2, %v204_v7  ;;  %v216_v12 = vmax.f32 %v196_v3, %v208_v11 }
  0xad   : > { %233 = vrot.lane.b32.xlu0 %v213_v5, %s763_s20  ;;  %223 = vrot.lane.b32.xlu1 %v214_v8, %s762_s27 }
  0xb1   : > { %225 = vrot.lane.b32.xlu0 %v215_v10, %s762_s27  ;;  %235 = vrot.lane.b32.xlu1 %v214_v8, %s763_s20 }
  0xb5   : > { %237 = vrot.lane.b32.xlu0 %v215_v10, %s763_s20  ;;  %227 = vrot.lane.b32.xlu1 %v216_v12, %s762_s27 }
  0xb9   : > { %239 = vrot.lane.b32.xlu1 %v216_v12, %s763_s20 }
 0x11b   : > { %v222_v13 = vpop.permute.xlu0 %221 }
 0x11f   : > { %v224_v14 = vpop.permute.xlu1 %223  ;;  %v234_v15 = vpop.permute.xlu0 %233 }
 0x120   : > { %v246_v16 = vsel %vm245_vm0, %v222_v13, %v234_v15 }
 0x121   : > { %v250_v20 = vmax.f32 %v213_v5, %v246_v16 }
 0x123   : > { %v236_v17 = vpop.permute.xlu1 %235  ;;  %v226_v18 = vpop.permute.xlu0 %225 }
 0x124   : > { %v247_v19 = vsel %vm245_vm0, %v224_v14, %v236_v17 }
 0x125   : > { %v251_v21 = vmax.f32 %v214_v8, %v247_v19 }
 0x127   : > { %v228_v22 = vpop.permute.xlu1 %227  ;;  %v238_v23 = vpop.permute.xlu0 %237  ;;  %v254_v24 = vpack.c.bf16 %v251_v21, %v250_v20 }
 0x128   : > { %v248_v27 = vsel %vm245_vm0, %v226_v18, %v238_v23 }
 0x129   : > { %597 = vmatprep.mubr.msk.bf16.mxu0 %vm284_vm1, %v254_v24  ;;  %v256_v25 = vunpack.c.l.bf16 %v254_v24  ;;  %v257_v26 = vunpack.c.h.bf16 %v254_v24  ;;  %v252_v32 = vmax.f32 %v215_v10, %v248_v27 }
 0x12b   : > { %v240_v28 = vpop.permute.xlu1 %239  ;;  %v260_v29 = vsub.f32 %v250_v20, %v256_v25  ;;  %v261_v30 = vsub.f32 %v251_v21, %v257_v26 }
 0x12c   : > { %v249_v31 = vsel %vm245_vm0, %v228_v22, %v240_v28 }
 0x12d   : > { %v253_v33 = vmax.f32 %v216_v12, %v249_v31  ;;  %v264_v34 = vpack.c.bf16 %v261_v30, %v260_v29 }
 0x12f   : > { %v255_v35 = vpack.c.bf16 %v253_v33, %v252_v32  ;;  %v266_v36 = vunpack.c.l.bf16 %v264_v34  ;;  %v267_v37 = vunpack.c.h.bf16 %v264_v34  ;;  %591 = vmatprep.mubr.msk.bf16.mxu1 %vm284_vm1, %v264_v34 }
 0x131   : > { %v258_v38 = vunpack.c.l.bf16 %v255_v35  ;;  %v259_v39 = vunpack.c.h.bf16 %v255_v35  ;;  %v270_v40 = vsub.f32 %v260_v29, %v266_v36  ;;  %v271_v41 = vsub.f32 %v261_v30, %v267_v37  ;;  %598 = vmatmul.mubr.msk.bf16.vlgmr.msra.gmra.mrb[0].mxu0 %vm284_vm1, %v255_v35 }
 0x132   : > { %602 = vmatpush3.bf16.msra.mxu0 %v675_v9 }
 0x133   : > { %v262_v42 = vsub.f32 %v252_v32, %v258_v38  ;;  %v263_v43 = vsub.f32 %v253_v33, %v259_v39  ;;  %v274_v44 = vpack.c.bf16 %v271_v41, %v270_v40 }
 0x135   : > { %v265_v45 = vpack.c.bf16 %v263_v43, %v262_v42  ;;  %603 = vmatprep.mubr.msk.bf16.mxu0 %vm284_vm1, %v274_v44 }
 0x137   : > { %v268_v46 = vunpack.c.l.bf16 %v265_v45  ;;  %v269_v47 = vunpack.c.h.bf16 %v265_v45  ;;  %592 = vmatmul.mubr.msk.bf16.vlgmr.msra.gmra.mrb[0].mxu1 %vm284_vm1, %v265_v45 }
 0x139   : > { %v272_v48 = vsub.f32 %v262_v42, %v268_v46  ;;  %v273_v49 = vsub.f32 %v263_v43, %v269_v47 }
 0x13b   : > { %v275_v50 = vpack.c.bf16 %v273_v49, %v272_v48 }
 0x13d   : > { %604 = vmatmul.mubr.msk.bf16.vlgmr.msra.gmra.mrb[0].mxu0 %vm284_vm1, %v275_v50 }
 0x20a   : > { %v593_v51 = vpop.f32.mrb[0].mxu1 }
 0x20b   : > { %v325_v52 = vpop.f32.mrb[1].mxu1 }
 0x20c   : > { %v594_v53 = vpop.f32.mrb[2].mxu1 }
 0x20d   : > { %v328_v54 = vpop.f32.mrb[3].mxu1 }
 0x210   : > { %v605_v55 = vpop.f32.mrb[0].mxu0 }
 0x211   : > { %v607_v56 = vadd.f32 %v605_v55, %v593_v51  ;;  %v435_v57 = vpop.f32.mrb[1].mxu0 }
 0x212   : > { %v608_v58 = vadd.f32 %v435_v57, %v325_v52  ;;  %v606_v59 = vpop.f32.mrb[2].mxu0 }
 0x213   : > { %457 = vst.msk [vmem:[%s190_s7 + $0x10] sm:$0xff] %vm454_vm2, %v607_v56  ;;  %461 = vst.msk [vmem:[%s190_s7 + $0x30] sm:$0xff] %vm454_vm2, %v607_v56  ;;  %v609_v60 = vadd.f32 %v606_v59, %v594_v53  ;;  %v438_v61 = vpop.f32.mrb[3].mxu0 }
 0x214   : > { %455 = vst.msk [vmem:[%s190_s7] sm:$0xff] %vm454_vm2, %v608_v58  ;;  %459 = vst.msk [vmem:[%s190_s7 + $0x20] sm:$0xff] %vm454_vm2, %v608_v58  ;;  %v610_v62 = vadd.f32 %v438_v61, %v328_v54 }
 0x215   : > { %458 = vst.msk [vmem:[%s190_s7 + $0x18] sm:$0xff] %vm454_vm2, %v609_v60  ;;  %462 = vst.msk [vmem:[%s190_s7 + $0x38] sm:$0xff] %vm454_vm2, %v609_v60 }
 0x216   : > { %456 = vst.msk [vmem:[%s190_s7 + $0x8] sm:$0xff] %vm454_vm2, %v610_v62  ;;  %460 = vst.msk [vmem:[%s190_s7 + $0x28] sm:$0xff] %vm454_vm2, %v610_v62 }
 0x217 PF: > { %s15_s14 = sadd.s32 1, %s756_s14   ;;  %s922_s9 = smov %s740_s10 }
 0x218   : > { %p12_p9 = scmp.ge.s32.totalorder %s15_s14, 4   ;;  %s923_s10 = smov %s744_s11 }
 0x219   : > { %s924_s11 = smov %s828_s21  ;;  %s925_s12 = smov %s752_s13 }
 0x21a   : > { %s926_s13 = smov %s928_s16  ;;  %14 = sbr.rel (!%p12_p9) target bundleno = 4 (0x4), region = 68 }
 0x221   :  { %493 = vsyncpa [#allocation3], 1 }
 0x222   :  { %495 = vsyncpa [#allocation3 + $0x1], 1 }

</bundles_post_ra>
